<compile_context>
chip_gen: v7x
topology: tpu7x:2x2x1
jax: 0.10.0
libtpu: 0.0.40
codegen_flags: <defaults>
</compile_context>

<pallas_src>
import functools
import math

import jax
import jax.numpy as jnp
from jax.experimental import pallas as pl
from jax.experimental.pallas import tpu as pltpu


def policy_kernel(x_ref, w1_ref, b1_ref, w2v_ref, b2v_ref, out_ref, *, action_size):
    # fc1 + ReLU (MXU matmul with f32 accumulation; elementwise in f32)
    h = jnp.dot(x_ref[...], w1_ref[...], preferred_element_type=jnp.float32)
    h = jnp.maximum(h + b1_ref[...], 0.0)                          # (TB, H) f32

    # fused fc2 + value head: one matmul producing (TB, A+1) = [logits | value]
    lv = jnp.dot(h.astype(w2v_ref.dtype), w2v_ref[...],
                 preferred_element_type=jnp.float32) + b2v_ref[...]

    # numerically-stable softmax over the first `action_size` lanes only,
    # expressed with a lane mask (no lane-axis slicing / concatenation).
    col = jax.lax.broadcasted_iota(jnp.int32, lv.shape, 1)
    is_logit = col < action_size
    neg_inf = jnp.float32(-jnp.inf)
    m = jnp.max(jnp.where(is_logit, lv, neg_inf), axis=-1, keepdims=True)
    e = jnp.where(is_logit, jnp.exp(lv - m), 0.0)
    inv = pl.reciprocal(jnp.sum(e, axis=-1, keepdims=True), approx=True)

    # packed store: probs in the first A columns, raw value in the last one
    out_ref[...] = jnp.where(is_logit, e * inv, lv)


def policy_forward(state, params, *, matmul_dtype=jnp.bfloat16, max_batch_tile=512):
    """Fused Policy forward as a single batched Pallas kernel.

    state:  (B, state_size) float32
    params: dict of w1,b1,w2,b2,wv,bv (weights stored [in, out])
    returns: (probs (B, action_size), value (B,))
    """
    B, S = state.shape
    H = params["w1"].shape[1]
    A = params["w2"].shape[1]

    # Fuse the two output heads into a single (H, A+1) weight / (1, A+1) bias.
    w2v = jnp.concatenate([params["w2"], params["wv"]], axis=1)
    b2v = jnp.concatenate([params["b2"], params["bv"]], axis=1).astype(jnp.float32)

    # bf16 operands for the MXU (f32 accumulation inside); biases stay f32.
    x = state.astype(matmul_dtype)
    w1 = params["w1"].astype(matmul_dtype)
    w2v = w2v.astype(matmul_dtype)
    b1 = params["b1"].astype(jnp.float32)

    # Batch tile: full array for small B (block == array dims is always legal),
    # otherwise 512-row tiles (multiple of 8 sublanes) for large rollout batches.
    TB = B if B <= max_batch_tile else max_batch_tile
    grid = (pl.cdiv(B, TB),)

    kernel = functools.partial(policy_kernel, action_size=A)

    out = pl.pallas_call(
        kernel,
        out_shape=jax.ShapeDtypeStruct((B, A + 1), jnp.float32),
        grid=grid,
        in_specs=[
            pl.BlockSpec((TB, S), lambda i: (i, 0)),        # state: tiled over batch
            pl.BlockSpec((S, H), lambda i: (0, 0)),         # w1: resident
            pl.BlockSpec((1, H), lambda i: (0, 0)),         # b1: resident
            pl.BlockSpec((H, A + 1), lambda i: (0, 0)),     # fused w2|wv: resident
            pl.BlockSpec((1, A + 1), lambda i: (0, 0)),     # fused b2|bv: resident
        ],
        out_specs=pl.BlockSpec((TB, A + 1), lambda i: (i, 0)),
        compiler_params=pltpu.CompilerParams(
            dimension_semantics=("parallel",)),
    )(x, w1, b1, w2v, b2v)

    probs = out[:, :A]
    value = out[:, A]
    return probs, value


def policy_reference(state, params, *, matmul_dtype=jnp.bfloat16):
    """Pure-JAX reference with matching dtype policy (for validation)."""
    A = params["w2"].shape[1]
    w2v = jnp.concatenate([params["w2"], params["wv"]], axis=1).astype(matmul_dtype)
    b2v = jnp.concatenate([params["b2"], params["bv"]], axis=1).astype(jnp.float32)
    h = jnp.dot(state.astype(matmul_dtype), params["w1"].astype(matmul_dtype),
                preferred_element_type=jnp.float32) + params["b1"]
    h = jnp.maximum(h, 0.0)
    lv = jnp.dot(h.astype(matmul_dtype), w2v,
                 preferred_element_type=jnp.float32) + b2v
    probs = jax.nn.softmax(lv[:, :A], axis=-1)
    value = lv[:, A]
    return probs, value


def init_params(key, state_size=4, action_size=2, hidden_size=32):
    """Deterministic init mimicking nn.Linear default (uniform ±1/sqrt(fan_in))."""
    def linear(k, fan_in, fan_out):
        kw, kb = jax.random.split(k)
        bound = 1.0 / math.sqrt(fan_in)
        # stored as [in, out] so the kernel does x @ W
        w = jax.random.uniform(kw, (fan_in, fan_out), jnp.float32, -bound, bound)
        b = jax.random.uniform(kb, (1, fan_out), jnp.float32, -bound, bound)
        return w, b

    k1, k2, k3 = jax.random.split(key, 3)
    w1, b1 = linear(k1, state_size, hidden_size)
    w2, b2 = linear(k2, hidden_size, action_size)
    wv, bv = linear(k3, hidden_size, 1)
    return {"w1": w1, "b1": b1, "w2": w2, "b2": b2, "wv": wv, "bv": bv}


if __name__ == "__main__":
    key = jax.random.PRNGKey(0)
    k_params, k_state = jax.random.split(key)

    state_size, action_size, hidden_size, batch = 4, 2, 32, 2
    params = init_params(k_params, state_size, action_size, hidden_size)
    state = jax.random.normal(k_state, (batch, state_size), dtype=jnp.float32)

    probs, value = jax.jit(policy_forward)(state, params)
    jax.block_until_ready((probs, value))

    # sanity: shapes match the PyTorch module, softmax rows sum to ~1
    assert probs.shape == (batch, action_size)
    assert value.shape == (batch,)
    assert bool(jnp.all(jnp.abs(jnp.sum(probs, axis=-1) - 1.0) < 1e-2))

    # compare against a pure-JAX reference with the same dtype policy
    ref_probs, ref_value = policy_reference(state, params)
    assert bool(jnp.allclose(probs, ref_probs, atol=2e-2))
    assert bool(jnp.allclose(value, ref_value, atol=2e-2))

    print("KERNEL_OK")
</pallas_src>

<mosaic_0001>
module attributes {stable_mosaic.version = 11 : i64} {
  func.func @policy_kernel(%arg0: i32, %arg1: memref<2x4xbf16, #tpu.memory_space<vmem>>, %arg2: memref<4x32xbf16, #tpu.memory_space<vmem>>, %arg3: memref<1x32xf32, #tpu.memory_space<vmem>>, %arg4: memref<32x3xbf16, #tpu.memory_space<vmem>>, %arg5: memref<1x3xf32, #tpu.memory_space<vmem>>, %arg6: memref<2x3xf32, #tpu.memory_space<vmem>>) attributes {dimension_semantics = [#tpu.dimension_semantics<parallel>], iteration_bounds = array<i64: 1>, scalar_prefetch = 0 : i64, scratch_operands = 0 : i64, tpu.core_type = #tpu.core_type<tc>, window_params = [{transform_indices = @transform_0, window_bounds = array<i64: 2, 4>}, {pipeline_mode = #tpu.pipeline_mode<synchronous>, transform_indices = @transform_1, window_bounds = array<i64: 4, 32>}, {pipeline_mode = #tpu.pipeline_mode<synchronous>, transform_indices = @transform_2, window_bounds = array<i64: 1, 32>}, {pipeline_mode = #tpu.pipeline_mode<synchronous>, transform_indices = @transform_3, window_bounds = array<i64: 32, 3>}, {pipeline_mode = #tpu.pipeline_mode<synchronous>, transform_indices = @transform_4, window_bounds = array<i64: 1, 3>}, {transform_indices = @transform_5, window_bounds = array<i64: 2, 3>}]} {
    %c0 = arith.constant 0 : index
    %c0_0 = arith.constant 0 : index
    %0 = vector.load %arg1[%c0, %c0_0] : memref<2x4xbf16, #tpu.memory_space<vmem>>, vector<2x4xbf16>
    %c0_1 = arith.constant 0 : index
    %c0_2 = arith.constant 0 : index
    %1 = vector.load %arg2[%c0_1, %c0_2] : memref<4x32xbf16, #tpu.memory_space<vmem>>, vector<4x32xbf16>
    %cst = arith.constant dense<0.000000e+00> : vector<2x32xf32>
    %2 = tpu.matmul %0, %1, %cst {dimension_numbers = #tpu.dot_dimension_numbers<[1], [0], [0], [1], [0, 0, 1, 1], [], []>} : vector<2x4xbf16>, vector<4x32xbf16>, vector<2x32xf32> -> vector<2x32xf32>
    %c0_3 = arith.constant 0 : index
    %c0_4 = arith.constant 0 : index
    %3 = vector.load %arg3[%c0_3, %c0_4] : memref<1x32xf32, #tpu.memory_space<vmem>>, vector<1x32xf32>
    %4 = vector.broadcast %3 : vector<1x32xf32> to vector<2x32xf32>
    %5 = arith.addf %2, %4 : vector<2x32xf32>
    %cst_5 = arith.constant 0.000000e+00 : f32
    %6 = vector.broadcast %cst_5 : f32 to vector<2x32xf32>
    %7 = arith.maximumf %5, %6 : vector<2x32xf32>
    %8 = arith.truncf %7 : vector<2x32xf32> to vector<2x32xbf16>
    %c0_6 = arith.constant 0 : index
    %c0_7 = arith.constant 0 : index
    %9 = vector.load %arg4[%c0_6, %c0_7] : memref<32x3xbf16, #tpu.memory_space<vmem>>, vector<32x3xbf16>
    %cst_8 = arith.constant dense<0.000000e+00> : vector<2x3xf32>
    %10 = tpu.matmul %8, %9, %cst_8 {dimension_numbers = #tpu.dot_dimension_numbers<[1], [0], [0], [1], [0, 0, 1, 1], [], []>} : vector<2x32xbf16>, vector<32x3xbf16>, vector<2x3xf32> -> vector<2x3xf32>
    %c0_9 = arith.constant 0 : index
    %c0_10 = arith.constant 0 : index
    %11 = vector.load %arg5[%c0_9, %c0_10] : memref<1x3xf32, #tpu.memory_space<vmem>>, vector<1x3xf32>
    %12 = vector.broadcast %11 : vector<1x3xf32> to vector<2x3xf32>
    %13 = arith.addf %10, %12 : vector<2x3xf32>
    %14 = tpu.iota {dimensions = array<i32: 1>} : vector<2x3xi32>
    %c2_i32 = arith.constant 2 : i32
    %15 = vector.broadcast %c2_i32 : i32 to vector<2x3xi32>
    %16 = arith.cmpi slt, %14, %15 : vector<2x3xi32>
    %cst_11 = arith.constant 0xFF800000 : f32
    %17 = vector.broadcast %cst_11 : f32 to vector<2x3xf32>
    %18 = arith.select %16, %13, %17 : vector<2x3xi1>, vector<2x3xf32>
    %cst_12 = arith.constant dense<0xFF800000> : vector<2xf32>
    %19 = vector.multi_reduction <maximumf>, %18, %cst_12 [1] : vector<2x3xf32> to vector<2xf32>
    %20 = vector.shape_cast %19 : vector<2xf32> to vector<2x1xf32>
    %21 = vector.broadcast %20 : vector<2x1xf32> to vector<2x3xf32>
    %22 = arith.subf %13, %21 : vector<2x3xf32>
    %23 = math.exp %22 : vector<2x3xf32>
    %cst_13 = arith.constant 0.000000e+00 : f32
    %24 = vector.broadcast %cst_13 : f32 to vector<2x3xf32>
    %25 = arith.select %16, %23, %24 : vector<2x3xi1>, vector<2x3xf32>
    %cst_14 = arith.constant dense<0.000000e+00> : vector<2xf32>
    %26 = vector.multi_reduction <add>, %25, %cst_14 [1] : vector<2x3xf32> to vector<2xf32>
    %27 = vector.shape_cast %26 : vector<2xf32> to vector<2x1xf32>
    %28 = tpu.reciprocal %27 {approx = true} : vector<2x1xf32> -> vector<2x1xf32>
    %29 = vector.broadcast %28 : vector<2x1xf32> to vector<2x3xf32>
    %30 = arith.mulf %25, %29 : vector<2x3xf32>
    %31 = arith.select %16, %30, %13 : vector<2x3xi1>, vector<2x3xf32>
    %c0_15 = arith.constant 0 : index
    %c0_16 = arith.constant 0 : index
    %32 = vector.load %arg6[%c0_15, %c0_16] : memref<2x3xf32, #tpu.memory_space<vmem>>, vector<2x3xf32>
    tpu.vector_store %arg6[%c0_15, %c0_16], %31 {strides = array<i32>} : memref<2x3xf32, #tpu.memory_space<vmem>>, vector<2x3xf32>,
    return
  }
  func.func @transform_0(%arg0: i32) -> (i32, i32) {
    %c0_i32 = arith.constant 0 : i32
    %c0_i32_0 = arith.constant 0 : i32
    return %arg0, %c0_i32 : i32, i32
  }
  func.func @transform_1(%arg0: i32) -> (i32, i32) {
    %c0_i32 = arith.constant 0 : i32
    %c0_i32_0 = arith.constant 0 : i32
    %c0_i32_1 = arith.constant 0 : i32
    return %c0_i32, %c0_i32_0 : i32, i32
  }
  func.func @transform_2(%arg0: i32) -> (i32, i32) {
    %c0_i32 = arith.constant 0 : i32
    %c0_i32_0 = arith.constant 0 : i32
    %c0_i32_1 = arith.constant 0 : i32
    return %c0_i32, %c0_i32_0 : i32, i32
  }
  func.func @transform_3(%arg0: i32) -> (i32, i32) {
    %c0_i32 = arith.constant 0 : i32
    %c0_i32_0 = arith.constant 0 : i32
    %c0_i32_1 = arith.constant 0 : i32
    return %c0_i32, %c0_i32_0 : i32, i32
  }
  func.func @transform_4(%arg0: i32) -> (i32, i32) {
    %c0_i32 = arith.constant 0 : i32
    %c0_i32_0 = arith.constant 0 : i32
    %c0_i32_1 = arith.constant 0 : i32
    return %c0_i32, %c0_i32_0 : i32, i32
  }
  func.func @transform_5(%arg0: i32) -> (i32, i32) {
    %c0_i32 = arith.constant 0 : i32
    %c0_i32_0 = arith.constant 0 : i32
    return %arg0, %c0_i32 : i32, i32
  }
}

</mosaic_0001>

<bundles_post_ra>
// kernel: policy_forward.1
= control target key start
LH: loop header
LB: loop body
LE: loop exit
PB: predicated region body
PF: predicated region fallthrough
CT: control target
= control target key end

     0   :  { %vm34_vm0 = vcmask 1041408   ;;  %v203_v0 = vmov 0.0   ;;  %vm204_vm1 = vmmov 0   ;;  %vm30_vm2 = vcmask 31744   ;;  %s262_s1 = inlined_call_operand.vmem [shape: bf16[4,32], index: 1, kind: input, shape index: {}]   ;;  %s263_s0 = inlined_call_operand.vmem [shape: bf16[2,4], index: 0, kind: input, shape index: {}]   ;;  %s264_s3 = inlined_call_operand.vmem [shape: bf16[32,3], index: 3, kind: input, shape index: {}]   ;;  %s265_s2 = inlined_call_operand.vmem [shape: f32[1,32], index: 2, kind: input, shape index: {}]   ;;  %s266_s4 = inlined_call_operand.vmem [shape: f32[1,3], index: 4, kind: input, shape index: {}]   ;;  %s267_s5 = inlined_call_operand.vmem [shape: f32[2,3], index: 5, kind: output, shape index: {}]  }
   0x1   :  { %181 = vmatprep.subr.bf16.mxu0 %v203_v0  ;;  %v22_v1 = vld [vmem:[%s262_s1] sm:$0x3]  ;;  %183 = vmatprep.mubr.msk.bf16.mxu0 %vm204_vm1, %v203_v0  ;;  %v198_v5 = vld [vmem:[%s264_s3 + $0x8] sm:$0xff]   ;;  %vm103_vm3 = vcmask 261120   ;;  %v147_v14 = vlaneseq  ;;  %vm151_vm5 = vcmask 17408  }
   0x2   :  { %v36_v2 = vsel %vm34_vm0, %v22_v1, 0  ;;  %187 = vmatprep.subr.bf16.mxu1 %v203_v0  ;;  %191 = vmatprep.mubr.msk.bf16.mxu1 %vm204_vm1, %v203_v0  ;;  %v21_v3 = vld [vmem:[%s263_s0] sm:$0x1] }
   0x3   :  { %182 = vmatpush3.bf16.msra.mxu0 %v36_v2  ;;  %v197_v4 = vld [vmem:[%s264_s3] sm:$0xff]   ;;  %v148_v15 = vand.u32 127, %v147_v14 }
   0x4   :  { %188 = vmatpush3.bf16.msra.mxu1 %v197_v4  ;;  %v170_v6 = vld [vmem:[%s265_s2] ss:$0 sm:$0xff] }
   0x5   :  { %189 = vmatprep.subr.bf16.mxu1 %v203_v0  ;;  %v172_v16 = vld [vmem:[%s266_s4] ss:$0 sm:$0xff]  ;;  %vm149_vm4 = vcmp.lt.s32.totalorder %v148_v15, 2 }
   0x6   :  { %184 = vmatmul.mubr.msk.bf16.vlgmr.msra.gmra.mrb[0].mxu0 %vm30_vm2, %v21_v3 }
   0x8   :  { %190 = vmatpush3.bf16.msra.mxu1 %v198_v5 }
  0xd9   :  { %v72_v7 = vpop.f32.mrb[0].mxu0 }
  0xda   :  { %v73_v8 = vadd.f32 %v170_v6, %v72_v7  ;;  %v185_v9 = vpop.f32.mrb[1].mxu0 }
  0xdb   :  { %v75_v10 = vpop.f32.mrb[2].mxu0 }
  0xdc   :  { %v78_v11 = vmax.f32 %v73_v8, 0.0  ;;  %v186_v12 = vpop.f32.mrb[3].mxu0 }
  0xde   :  { %v79_v13 = vpack.c.bf16 %v78_v11, %v78_v11 }
  0xe0   :  { %192 = vmatmul.mubr.msk.bf16.vlgmr.msra.gmra.mrb[0].mxu1 %vm103_vm3, %v79_v13 }
 0x1b3   :  { %v141_v17 = vpop.f32.mrb[0].mxu1 }
 0x1b4   :  { %v142_v18 = vadd.f32 %v172_v16, %v141_v17  ;;  %v193_v19 = vpop.f32.mrb[1].mxu1 }
 0x1b5   :  { %v144_v20 = vpop.f32.mrb[2].mxu1 }
 0x1b6   :  { %v194_v21 = vpop.f32.mrb[3].mxu1  ;;  %v150_v22 = vsel %vm149_vm4, %v142_v18, -inf }
 0x1b7   :  { %v152_v23 = vsel %vm151_vm5, %v150_v22, -inf }
 0x1b8   :  { %153 = vmax.xlane.f32.xlu0 %v152_v23 }
 0x245   :  { %v154_v24 = vpop.xlane.xlu0 %153 }
 0x246   :  { %v155_v25 = vsub.f32 %v142_v18, %v154_v24 }
 0x248   :  { %v156_v26 = vmul.f32 1.442695, %v155_v25 }
 0x24a   :  { %199 = vpow2.f32 %v156_v26 }
 0x254   :  { %v200_v27 = vpop.eup %199 }
 0x255   :  { %v158_v28 = vsel %vm149_vm4, %v200_v27, 0.0 }
 0x256   :  { %v159_v29 = vsel %vm151_vm5, %v158_v28, 0.0 }
 0x257   :  { %160 = vadd.xlane.f32.xlu0 %v159_v29 }
 0x2e4   :  { %v161_v30 = vpop.xlane.xlu0 %160 }
 0x2e5   :  { %201 = vrcp.f32 %v161_v30 }
 0x2ef   :  { %v202_v31 = vpop.eup %201 }
 0x2f0   :  { %v163_v32 = vmul.f32 %v202_v31, %v158_v28 }
 0x2f2   :  { %v164_v33 = vsel %vm149_vm4, %v163_v32, %v142_v18 }
 0x2f3   :  { %165 = vst.msk [vmem:[%s267_s5] sm:$0x3] %vm151_vm5, %v164_v33 }

</bundles_post_ra>
